<compile_context>
chip_gen: v7x
topology: tpu7x:2x2x1
jax: 0.10.0
libtpu: 0.0.40
codegen_flags: <defaults>
</compile_context>

<pallas_src>
import functools
import math

import jax
import jax.numpy as jnp
import numpy as np
from jax.experimental import pallas as pl
from jax.experimental.pallas import tpu as pltpu


# ---------------------------------------------------------------------------
# In-kernel helpers (f32 math)
# ---------------------------------------------------------------------------
def _gelu_exact(x):
    # PyTorch nn.GELU() default (approximate='none') -> erf-based GELU.
    return 0.5 * x * (1.0 + jax.lax.erf(x * (1.0 / math.sqrt(2.0))))


def _layer_norm(x, gamma, beta, eps=1e-5):
    mean = jnp.mean(x, axis=-1, keepdims=True)
    var = jnp.mean(jnp.square(x - mean), axis=-1, keepdims=True)
    inv = jax.lax.rsqrt(var + eps)
    return (x - mean) * inv * gamma + beta


def _vmem_limit_bytes():
    # Per-generation scoped-VMEM budget: ~3/4 of physical capacity
    # (v5e/v6e: 96 MiB, v7x: 48 MiB), capped, never below the 32 MiB default.
    try:
        cap = int(pltpu.get_tpu_info().vmem_capacity_bytes)
    except Exception:
        cap = 64 * 1024 * 1024
    return max(32 * 1024 * 1024, min(cap * 3 // 4, 100 * 1024 * 1024))


# ---------------------------------------------------------------------------
# Kernel 1: U_map -> GELU -> SGU -> V_map -> LN -> GELU -> residual average
#           (one block of `batch_block` whole sequences per grid step)
# ---------------------------------------------------------------------------
def _body_kernel(x_ref, wu_ref, bu_ref, g_sgu_ref, b_sgu_ref, ws_ref, bs_ref,
                 wv_ref, bv_ref, g_ln_ref, b_ln_ref, y_ref, *,
                 batch_block, seq_len, hidden_dim):
    x_bf = x_ref[...]                                 # (bb*S, E) bf16
    skip = x_bf.astype(jnp.float32)

    # U_map: Linear(E -> 2H) + GELU.  bf16 MXU operands, f32 accumulation.
    h = jnp.dot(x_bf, wu_ref[...],
                preferred_element_type=jnp.float32) + bu_ref[...]
    h = _gelu_exact(h)                                # (bb*S, 2H) f32

    # SpatialGatingUnit (tiny_attn=False path).  hidden_dim % 128 == 0 keeps
    # the u/v split lane-tile aligned (asserted in the wrapper).
    u = h[:, :hidden_dim]                             # (bb*S, H)
    v = _layer_norm(h[:, hidden_dim:], g_sgu_ref[...], b_sgu_ref[...])

    # spatial_proj: Conv1d(S, S, kernel_size=1) == per-sequence (S,S)@(S,H)
    # matmul, executed as a SINGLE batched contraction (no per-batch slices or
    # concatenate copies).  S is a multiple of 8, so the (bb,S,H) reshape is
    # sublane-tile aligned.
    v3 = v.reshape(batch_block, seq_len, hidden_dim).astype(jnp.bfloat16)
    ws3 = jnp.broadcast_to(ws_ref[...], (batch_block, seq_len, seq_len))
    vs = jnp.einsum('bts,bsh->bth', ws3, v3,
                    preferred_element_type=jnp.float32)
    vs = vs + bs_ref[...][None]                       # (bb,S,H) + (1,S,H)
    v = vs.reshape(batch_block * seq_len, hidden_dim)

    g = u * v                                         # gating, f32

    # V_map: Linear(H -> E)
    y = jnp.dot(g.astype(jnp.bfloat16), wv_ref[...],
                preferred_element_type=jnp.float32) + bv_ref[...]

    # LayerNorm + GELU + residual average (all f32).
    y = _gelu_exact(_layer_norm(y, g_ln_ref[...], b_ln_ref[...]))
    y = (y + skip) * 0.5

    # TODO(synk): xLSTMBlockStack internals are not provided in the reference
    # spec; treated as identity here.

    y_ref[...] = y.astype(y_ref.dtype)                # bf16 hand-off to lm_head


# ---------------------------------------------------------------------------
# Kernel 2: lm_head Linear(E -> V), no bias; tiled over rows and vocab
# ---------------------------------------------------------------------------
def _lm_head_kernel(y_ref, wh_ref, out_ref):
    out_ref[...] = jnp.dot(y_ref[...], wh_ref[...],
                           preferred_element_type=jnp.float32)


# ---------------------------------------------------------------------------
# Tiling heuristics
# ---------------------------------------------------------------------------
def _pick_vocab_tile(vocab_size):
    for vt in (2048, 1024, 512, 256, 128):
        if vocab_size % vt == 0:
            return vt
    raise ValueError("vocab_size must be a multiple of 128")


def _pick_row_tile(n_rows):
    for tm in (512, 256, 128, 64, 32, 16, 8):
        if tm <= n_rows and n_rows % tm == 0:
            return tm
    return n_rows


# ---------------------------------------------------------------------------
# Wrapper
# ---------------------------------------------------------------------------
def xlstm_lm_forward(idx, params, *, hidden_dim):
    emb = params["emb"]
    B, S = idx.shape
    E = emb.shape[1]
    V = params["w_head"].shape[1]
    assert hidden_dim % 128 == 0, "u/v split must stay lane-tile aligned"

    bf = jnp.bfloat16
    BS = B * S

    # Token embedding (gather) is plain-JAX glue; rows flattened to (B*S, E)
    # and handed to the kernel in bf16 (upcast in-kernel for the skip path).
    x = emb[idx].reshape(BS, E).astype(bf)

    # Body row block: split only if that yields >=2 parallel grid steps (v7x
    # megacore) while the bf16 row block stays sublane-dense (x16 rows) and
    # large enough to amortize per-step overhead.
    bb = B
    if B % 2 == 0 and ((B // 2) * S) % 16 == 0 and (B // 2) * S >= 256:
        bb = B // 2
    assert B % bb == 0, "batch block must divide batch"

    # One-time bf16 casts of the MXU weights (constant-folded under jit).
    w_u = params["w_u"].astype(bf)
    w_s = params["w_s"].astype(bf)
    w_v = params["w_v"].astype(bf)
    w_h = params["w_head"].astype(bf)
    # Spatial-conv bias pre-broadcast to a lane-dense (S, H) tile.
    b_s = jnp.broadcast_to(params["b_s"][:, None],
                           (S, hidden_dim)).astype(jnp.float32)

    vmem_limit = _vmem_limit_bytes()

    def full2d(arr):
        r, c = arr.shape
        return pl.BlockSpec((r, c), lambda i: (0, 0))

    # ---- body kernel -------------------------------------------------------
    body_flops = (2 * BS * E * 2 * hidden_dim
                  + 2 * B * S * S * hidden_dim
                  + 2 * BS * hidden_dim * E)
    body_bytes = (2 * BS * E                                   # x in (bf16)
                  + 2 * (E * 2 * hidden_dim + S * S + hidden_dim * E)  # bf16 W
                  + 4 * (4 * hidden_dim + S * hidden_dim + 3 * E)      # biases/LN
                  + 2 * BS * E)                                # y out (bf16)

    y = pl.pallas_call(
        functools.partial(_body_kernel, batch_block=bb, seq_len=S,
                          hidden_dim=hidden_dim),
        out_shape=jax.ShapeDtypeStruct((BS, E), bf),
        grid_spec=pltpu.PrefetchScalarGridSpec(
            num_scalar_prefetch=0,
            grid=(B // bb,),
            in_specs=[
                pl.BlockSpec((bb * S, E), lambda i: (i, 0)),   # x rows
                full2d(w_u), full2d(params["b_u"]),
                full2d(params["g_sgu"]), full2d(params["b_sgu"]),
                full2d(w_s), full2d(b_s),
                full2d(w_v), full2d(params["b_v"]),
                full2d(params["g_ln"]), full2d(params["b_ln"]),
            ],
            out_specs=pl.BlockSpec((bb * S, E), lambda i: (i, 0)),
        ),
        compiler_params=pltpu.CompilerParams(
            dimension_semantics=("parallel",),
            vmem_limit_bytes=vmem_limit),
        cost_estimate=pl.CostEstimate(
            flops=body_flops,
            transcendentals=BS * (2 * hidden_dim + E),
            bytes_accessed=body_bytes),
    )(x, w_u, params["b_u"], params["g_sgu"], params["b_sgu"],
      w_s, b_s, w_v, params["b_v"], params["g_ln"], params["b_ln"])

    # ---- lm_head kernel, tiled over rows AND vocab -------------------------
    vocab_tile = _pick_vocab_tile(V)
    row_tile = _pick_row_tile(BS)
    assert BS % row_tile == 0 and V % vocab_tile == 0

    head_flops = 2 * BS * E * V
    head_bytes = 2 * BS * E + 2 * E * V + 4 * BS * V
    logits = pl.pallas_call(
        _lm_head_kernel,
        out_shape=jax.ShapeDtypeStruct((BS, V), jnp.float32),
        grid_spec=pltpu.PrefetchScalarGridSpec(
            num_scalar_prefetch=0,
            grid=(BS // row_tile, V // vocab_tile),
            in_specs=[
                pl.BlockSpec((row_tile, E), lambda r, c: (r, 0)),      # acts
                pl.BlockSpec((E, vocab_tile), lambda r, c: (0, c)),    # vocab
            ],
            out_specs=pl.BlockSpec((row_tile, vocab_tile),
                                   lambda r, c: (r, c)),
        ),
        compiler_params=pltpu.CompilerParams(
            dimension_semantics=("parallel", "parallel"),
            vmem_limit_bytes=vmem_limit),
        cost_estimate=pl.CostEstimate(
            flops=head_flops, transcendentals=0, bytes_accessed=head_bytes),
    )(y, w_h)

    return logits.reshape(B, S, V)


# ---------------------------------------------------------------------------
# Pure-JAX reference (same math, bf16 matmul operands, f32 accumulation)
# ---------------------------------------------------------------------------
def xlstm_lm_reference(idx, params, *, hidden_dim):
    bf = jnp.bfloat16

    def mm(a, b):
        return jnp.dot(a.astype(bf), b.astype(bf),
                       preferred_element_type=jnp.float32)

    B, S = idx.shape
    E = params["emb"].shape[1]
    x = params["emb"][idx].reshape(B * S, E).astype(jnp.float32)
    skip = x

    h = _gelu_exact(mm(x, params["w_u"]) + params["b_u"])
    u, v = h[:, :hidden_dim], h[:, hidden_dim:]
    v = _layer_norm(v, params["g_sgu"], params["b_sgu"])
    v3 = v.reshape(B, S, hidden_dim)
    v = jnp.einsum('ts,bsh->bth', params["w_s"].astype(bf), v3.astype(bf),
                   preferred_element_type=jnp.float32)
    v = (v + params["b_s"][None, :, None]).reshape(B * S, hidden_dim)
    g = u * v
    y = mm(g, params["w_v"]) + params["b_v"]
    y = _gelu_exact(_layer_norm(y, params["g_ln"], params["b_ln"]))
    y = (y + skip) * 0.5
    logits = mm(y, params["w_head"])
    return logits.reshape(B, S, -1)


# ---------------------------------------------------------------------------
# Deterministic parameter construction (mirrors the module's __init__ shapes)
# ---------------------------------------------------------------------------
def make_params(key, *, vocab_size, embedding_dim, hidden_dim, seq_len):
    ks = jax.random.split(key, 8)
    scale = 0.02
    return {
        # nn.Embedding(vocab, E)
        "emb": scale * jax.random.normal(ks[0], (vocab_size, embedding_dim), jnp.float32),
        # U_map: Linear(E, 2H)   (stored (in, out))
        "w_u": scale * jax.random.normal(ks[1], (embedding_dim, 2 * hidden_dim), jnp.float32),
        "b_u": scale * jax.random.normal(ks[2], (1, 2 * hidden_dim), jnp.float32),
        # SGU LayerNorm(H)
        "g_sgu": jnp.ones((1, hidden_dim), jnp.float32),
        "b_sgu": jnp.zeros((1, hidden_dim), jnp.float32),
        # SGU spatial_proj: Conv1d(S, S, 1) -> (S, S) weight, bias init to 1.0
        "w_s": scale * jax.random.normal(ks[3], (seq_len, seq_len), jnp.float32),
        "b_s": jnp.ones((seq_len,), jnp.float32),
        # V_map: Linear(H, E)
        "w_v": scale * jax.random.normal(ks[4], (hidden_dim, embedding_dim), jnp.float32),
        "b_v": scale * jax.random.normal(ks[5], (1, embedding_dim), jnp.float32),
        # final LayerNorm(E)
        "g_ln": jnp.ones((1, embedding_dim), jnp.float32),
        "b_ln": jnp.zeros((1, embedding_dim), jnp.float32),
        # lm_head: Linear(E, V), no bias  (stored (in, out))
        "w_head": scale * jax.random.normal(ks[6], (embedding_dim, vocab_size), jnp.float32),
    }


if __name__ == "__main__":
    B, S = 2, 8                  # batch, context_length
    E = 128                      # embedding_dim (lane-aligned)
    H = 256                      # hidden_dim (fixed to 256 in the module)
    V = 512                      # vocab_size (multiple of the 128-lane tile)

    key = jax.random.PRNGKey(0)
    pkey, ikey = jax.random.split(key)
    params = make_params(pkey, vocab_size=V, embedding_dim=E, hidden_dim=H, seq_len=S)
    idx = jax.random.randint(ikey, (B, S), 0, V, dtype=jnp.int32)

    fwd = jax.jit(functools.partial(xlstm_lm_forward, hidden_dim=H))
    logits = jax.block_until_ready(fwd(idx, params))

    ref = xlstm_lm_reference(idx, params, hidden_dim=H)
    np.testing.assert_allclose(np.asarray(logits), np.asarray(ref),
                               rtol=2e-2, atol=2e-3)

    assert logits.shape == (B, S, V)
    print("KERNEL_OK")
</pallas_src>

<mosaic_0001>
module attributes {stable_mosaic.version = 11 : i64} {
  func.func @_lm_head_kernel(%arg0: i32, %arg1: i32, %arg2: memref<16x128xbf16, #tpu.memory_space<vmem>>, %arg3: memref<128x512xbf16, #tpu.memory_space<vmem>>, %arg4: memref<16x512xf32, #tpu.memory_space<vmem>>) attributes {dimension_semantics = [#tpu.dimension_semantics<parallel>, #tpu.dimension_semantics<parallel>], iteration_bounds = array<i64: 1, 1>, scalar_prefetch = 0 : i64, scratch_operands = 0 : i64, tpu.core_type = #tpu.core_type<tc>, window_params = [{transform_indices = @transform_0, window_bounds = array<i64: 16, 128>}, {transform_indices = @transform_1, window_bounds = array<i64: 128, 512>}, {transform_indices = @transform_2, window_bounds = array<i64: 16, 512>}]} {
    %c0 = arith.constant 0 : index
    %c0_0 = arith.constant 0 : index
    %0 = vector.load %arg2[%c0, %c0_0] : memref<16x128xbf16, #tpu.memory_space<vmem>>, vector<16x128xbf16>
    %c0_1 = arith.constant 0 : index
    %c0_2 = arith.constant 0 : index
    %1 = vector.load %arg3[%c0_1, %c0_2] : memref<128x512xbf16, #tpu.memory_space<vmem>>, vector<128x512xbf16>
    %cst = arith.constant dense<0.000000e+00> : vector<16x512xf32>
    %2 = tpu.matmul %0, %1, %cst {dimension_numbers = #tpu.dot_dimension_numbers<[1], [0], [0], [1], [0, 0, 1, 1], [], []>} : vector<16x128xbf16>, vector<128x512xbf16>, vector<16x512xf32> -> vector<16x512xf32>
    %c0_3 = arith.constant 0 : index
    %c0_4 = arith.constant 0 : index
    %3 = vector.load %arg4[%c0_3, %c0_4] : memref<16x512xf32, #tpu.memory_space<vmem>>, vector<16x512xf32>
    tpu.vector_store %arg4[%c0_3, %c0_4], %2 {strides = array<i32>} : memref<16x512xf32, #tpu.memory_space<vmem>>, vector<16x512xf32>,
    return
  }
  func.func @transform_0(%arg0: i32, %arg1: i32) -> (i32, i32) {
    %c0_i32 = arith.constant 0 : i32
    %c0_i32_0 = arith.constant 0 : i32
    return %arg0, %c0_i32 : i32, i32
  }
  func.func @transform_1(%arg0: i32, %arg1: i32) -> (i32, i32) {
    %c0_i32 = arith.constant 0 : i32
    %c0_i32_0 = arith.constant 0 : i32
    return %c0_i32, %arg1 : i32, i32
  }
  func.func @transform_2(%arg0: i32, %arg1: i32) -> (i32, i32) {
    %c0_i32 = arith.constant 0 : i32
    return %arg0, %arg1 : i32, i32
  }
}

module attributes {stable_mosaic.version = 11 : i64} {
  func.func @_body_kernel(%arg0: i32, %arg1: memref<16x128xbf16, #tpu.memory_space<vmem>>, %arg2: memref<128x512xbf16, #tpu.memory_space<vmem>>, %arg3: memref<1x512xf32, #tpu.memory_space<vmem>>, %arg4: memref<1x256xf32, #tpu.memory_space<vmem>>, %arg5: memref<1x256xf32, #tpu.memory_space<vmem>>, %arg6: memref<8x8xbf16, #tpu.memory_space<vmem>>, %arg7: memref<8x256xf32, #tpu.memory_space<vmem>>, %arg8: memref<256x128xbf16, #tpu.memory_space<vmem>>, %arg9: memref<1x128xf32, #tpu.memory_space<vmem>>, %arg10: memref<1x128xf32, #tpu.memory_space<vmem>>, %arg11: memref<1x128xf32, #tpu.memory_space<vmem>>, %arg12: memref<16x128xbf16, #tpu.memory_space<vmem>>) attributes {dimension_semantics = [#tpu.dimension_semantics<parallel>], iteration_bounds = array<i64: 1>, scalar_prefetch = 0 : i64, scratch_operands = 0 : i64, tpu.core_type = #tpu.core_type<tc>, window_params = [{transform_indices = @transform_0, window_bounds = array<i64: 16, 128>}, {pipeline_mode = #tpu.pipeline_mode<synchronous>, transform_indices = @transform_1, window_bounds = array<i64: 128, 512>}, {pipeline_mode = #tpu.pipeline_mode<synchronous>, transform_indices = @transform_2, window_bounds = array<i64: 1, 512>}, {pipeline_mode = #tpu.pipeline_mode<synchronous>, transform_indices = @transform_3, window_bounds = array<i64: 1, 256>}, {pipeline_mode = #tpu.pipeline_mode<synchronous>, transform_indices = @transform_4, window_bounds = array<i64: 1, 256>}, {pipeline_mode = #tpu.pipeline_mode<synchronous>, transform_indices = @transform_5, window_bounds = array<i64: 8, 8>}, {pipeline_mode = #tpu.pipeline_mode<synchronous>, transform_indices = @transform_6, window_bounds = array<i64: 8, 256>}, {pipeline_mode = #tpu.pipeline_mode<synchronous>, transform_indices = @transform_7, window_bounds = array<i64: 256, 128>}, {pipeline_mode = #tpu.pipeline_mode<synchronous>, transform_indices = @transform_8, window_bounds = array<i64: 1, 128>}, {pipeline_mode = #tpu.pipeline_mode<synchronous>, transform_indices = @transform_9, window_bounds = array<i64: 1, 128>}, {pipeline_mode = #tpu.pipeline_mode<synchronous>, transform_indices = @transform_10, window_bounds = array<i64: 1, 128>}, {transform_indices = @transform_11, window_bounds = array<i64: 16, 128>}]} {
    %c0 = arith.constant 0 : index
    %c0_0 = arith.constant 0 : index
    %0 = vector.load %arg1[%c0, %c0_0] : memref<16x128xbf16, #tpu.memory_space<vmem>>, vector<16x128xbf16>
    %1 = arith.extf %0 : vector<16x128xbf16> to vector<16x128xf32>
    %c0_1 = arith.constant 0 : index
    %c0_2 = arith.constant 0 : index
    %2 = vector.load %arg2[%c0_1, %c0_2] : memref<128x512xbf16, #tpu.memory_space<vmem>>, vector<128x512xbf16>
    %cst = arith.constant dense<0.000000e+00> : vector<16x512xf32>
    %3 = tpu.matmul %0, %2, %cst {dimension_numbers = #tpu.dot_dimension_numbers<[1], [0], [0], [1], [0, 0, 1, 1], [], []>} : vector<16x128xbf16>, vector<128x512xbf16>, vector<16x512xf32> -> vector<16x512xf32>
    %c0_3 = arith.constant 0 : index
    %c0_4 = arith.constant 0 : index
    %4 = vector.load %arg3[%c0_3, %c0_4] : memref<1x512xf32, #tpu.memory_space<vmem>>, vector<1x512xf32>
    %5 = vector.broadcast %4 : vector<1x512xf32> to vector<16x512xf32>
    %6 = arith.addf %3, %5 : vector<16x512xf32>
    %cst_5 = arith.constant 5.000000e-01 : f32
    %7 = vector.broadcast %cst_5 : f32 to vector<16x512xf32>
    %8 = arith.mulf %7, %6 : vector<16x512xf32>
    %cst_6 = arith.constant 0.707106769 : f32
    %9 = vector.broadcast %cst_6 : f32 to vector<16x512xf32>
    %10 = arith.mulf %6, %9 : vector<16x512xf32>
    %11 = math.erf %10 : vector<16x512xf32>
    %cst_7 = arith.constant 1.000000e+00 : f32
    %12 = vector.broadcast %cst_7 : f32 to vector<16x512xf32>
    %13 = arith.addf %12, %11 : vector<16x512xf32>
    %14 = arith.mulf %8, %13 : vector<16x512xf32>
    %15 = vector.extract_strided_slice %14 {offsets = [0, 0], sizes = [16, 256], strides = [1, 1]} : vector<16x512xf32> to vector<16x256xf32>
    %16 = vector.extract_strided_slice %14 {offsets = [0, 256], sizes = [16, 256], strides = [1, 1]} : vector<16x512xf32> to vector<16x256xf32>
    %c0_8 = arith.constant 0 : index
    %c0_9 = arith.constant 0 : index
    %17 = vector.load %arg4[%c0_8, %c0_9] : memref<1x256xf32, #tpu.memory_space<vmem>>, vector<1x256xf32>
    %c0_10 = arith.constant 0 : index
    %c0_11 = arith.constant 0 : index
    %18 = vector.load %arg5[%c0_10, %c0_11] : memref<1x256xf32, #tpu.memory_space<vmem>>, vector<1x256xf32>
    %cst_12 = arith.constant dense<0.000000e+00> : vector<16xf32>
    %19 = vector.multi_reduction <add>, %16, %cst_12 [1] : vector<16x256xf32> to vector<16xf32>
    %20 = vector.shape_cast %19 : vector<16xf32> to vector<16x1xf32>
    %cst_13 = arith.constant 2.560000e+02 : f32
    %21 = vector.broadcast %cst_13 : f32 to vector<16x1xf32>
    %22 = arith.divf %20, %21 : vector<16x1xf32>
    %23 = vector.broadcast %22 : vector<16x1xf32> to vector<16x256xf32>
    %24 = arith.subf %16, %23 : vector<16x256xf32>
    %25 = arith.mulf %24, %24 : vector<16x256xf32>
    %cst_14 = arith.constant dense<0.000000e+00> : vector<16xf32>
    %26 = vector.multi_reduction <add>, %25, %cst_14 [1] : vector<16x256xf32> to vector<16xf32>
    %27 = vector.shape_cast %26 : vector<16xf32> to vector<16x1xf32>
    %cst_15 = arith.constant 2.560000e+02 : f32
    %28 = vector.broadcast %cst_15 : f32 to vector<16x1xf32>
    %29 = arith.divf %27, %28 : vector<16x1xf32>
    %cst_16 = arith.constant 9.99999974E-6 : f32
    %30 = vector.broadcast %cst_16 : f32 to vector<16x1xf32>
    %31 = arith.addf %29, %30 : vector<16x1xf32>
    %32 = math.rsqrt %31 : vector<16x1xf32>
    %33 = vector.broadcast %22 : vector<16x1xf32> to vector<16x256xf32>
    %34 = arith.subf %16, %33 : vector<16x256xf32>
    %35 = vector.broadcast %32 : vector<16x1xf32> to vector<16x256xf32>
    %36 = arith.mulf %34, %35 : vector<16x256xf32>
    %37 = vector.broadcast %17 : vector<1x256xf32> to vector<16x256xf32>
    %38 = arith.mulf %36, %37 : vector<16x256xf32>
    %39 = vector.broadcast %18 : vector<1x256xf32> to vector<16x256xf32>
    %40 = arith.addf %38, %39 : vector<16x256xf32>
    %41 = vector.shape_cast %40 : vector<16x256xf32> to vector<2x8x256xf32>
    %42 = arith.truncf %41 : vector<2x8x256xf32> to vector<2x8x256xbf16>
    %c0_17 = arith.constant 0 : index
    %c0_18 = arith.constant 0 : index
    %43 = vector.load %arg6[%c0_17, %c0_18] : memref<8x8xbf16, #tpu.memory_space<vmem>>, vector<8x8xbf16>
    %44 = vector.shape_cast %43 : vector<8x8xbf16> to vector<1x8x8xbf16>
    %45 = vector.broadcast %44 : vector<1x8x8xbf16> to vector<2x8x8xbf16>
    "tpu.trace_start"() <{level = 10 : i32, message = "bts,bsh->bth"}> : () -> ()
    %cst_19 = arith.constant dense<0.000000e+00> : vector<2x8x256xf32>
    %46 = tpu.matmul %45, %42, %cst_19 {dimension_numbers = #tpu.dot_dimension_numbers<[2], [1], [1], [2], [0, 0, 0, 1, 1, 2], [0], [0]>} : vector<2x8x8xbf16>, vector<2x8x256xbf16>, vector<2x8x256xf32> -> vector<2x8x256xf32>
    "tpu.trace_stop"() : () -> ()
    %c0_20 = arith.constant 0 : index
    %c0_21 = arith.constant 0 : index
    %47 = vector.load %arg7[%c0_20, %c0_21] : memref<8x256xf32, #tpu.memory_space<vmem>>, vector<8x256xf32>
    %48 = vector.shape_cast %47 : vector<8x256xf32> to vector<1x8x256xf32>
    %49 = vector.broadcast %48 : vector<1x8x256xf32> to vector<2x8x256xf32>
    %50 = arith.addf %46, %49 : vector<2x8x256xf32>
    %51 = vector.shape_cast %50 : vector<2x8x256xf32> to vector<16x256xf32>
    %52 = arith.mulf %15, %51 : vector<16x256xf32>
    %53 = arith.truncf %52 : vector<16x256xf32> to vector<16x256xbf16>
    %c0_22 = arith.constant 0 : index
    %c0_23 = arith.constant 0 : index
    %54 = vector.load %arg8[%c0_22, %c0_23] : memref<256x128xbf16, #tpu.memory_space<vmem>>, vector<256x128xbf16>
    %cst_24 = arith.constant dense<0.000000e+00> : vector<16x128xf32>
    %55 = tpu.matmul %53, %54, %cst_24 {dimension_numbers = #tpu.dot_dimension_numbers<[1], [0], [0], [1], [0, 0, 1, 1], [], []>} : vector<16x256xbf16>, vector<256x128xbf16>, vector<16x128xf32> -> vector<16x128xf32>
    %c0_25 = arith.constant 0 : index
    %c0_26 = arith.constant 0 : index
    %56 = vector.load %arg9[%c0_25, %c0_26] : memref<1x128xf32, #tpu.memory_space<vmem>>, vector<1x128xf32>
    %57 = vector.broadcast %56 : vector<1x128xf32> to vector<16x128xf32>
    %58 = arith.addf %55, %57 : vector<16x128xf32>
    %c0_27 = arith.constant 0 : index
    %c0_28 = arith.constant 0 : index
    %59 = vector.load %arg10[%c0_27, %c0_28] : memref<1x128xf32, #tpu.memory_space<vmem>>, vector<1x128xf32>
    %c0_29 = arith.constant 0 : index
    %c0_30 = arith.constant 0 : index
    %60 = vector.load %arg11[%c0_29, %c0_30] : memref<1x128xf32, #tpu.memory_space<vmem>>, vector<1x128xf32>
    %cst_31 = arith.constant dense<0.000000e+00> : vector<16xf32>
    %61 = vector.multi_reduction <add>, %58, %cst_31 [1] : vector<16x128xf32> to vector<16xf32>
    %62 = vector.shape_cast %61 : vector<16xf32> to vector<16x1xf32>
    %cst_32 = arith.constant 1.280000e+02 : f32
    %63 = vector.broadcast %cst_32 : f32 to vector<16x1xf32>
    %64 = arith.divf %62, %63 : vector<16x1xf32>
    %65 = vector.broadcast %64 : vector<16x1xf32> to vector<16x128xf32>
    %66 = arith.subf %58, %65 : vector<16x128xf32>
    %67 = arith.mulf %66, %66 : vector<16x128xf32>
    %cst_33 = arith.constant dense<0.000000e+00> : vector<16xf32>
    %68 = vector.multi_reduction <add>, %67, %cst_33 [1] : vector<16x128xf32> to vector<16xf32>
    %69 = vector.shape_cast %68 : vector<16xf32> to vector<16x1xf32>
    %cst_34 = arith.constant 1.280000e+02 : f32
    %70 = vector.broadcast %cst_34 : f32 to vector<16x1xf32>
    %71 = arith.divf %69, %70 : vector<16x1xf32>
    %cst_35 = arith.constant 9.99999974E-6 : f32
    %72 = vector.broadcast %cst_35 : f32 to vector<16x1xf32>
    %73 = arith.addf %71, %72 : vector<16x1xf32>
    %74 = math.rsqrt %73 : vector<16x1xf32>
    %75 = vector.broadcast %64 : vector<16x1xf32> to vector<16x128xf32>
    %76 = arith.subf %58, %75 : vector<16x128xf32>
    %77 = vector.broadcast %74 : vector<16x1xf32> to vector<16x128xf32>
    %78 = arith.mulf %76, %77 : vector<16x128xf32>
    %79 = vector.broadcast %59 : vector<1x128xf32> to vector<16x128xf32>
    %80 = arith.mulf %78, %79 : vector<16x128xf32>
    %81 = vector.broadcast %60 : vector<1x128xf32> to vector<16x128xf32>
    %82 = arith.addf %80, %81 : vector<16x128xf32>
    %cst_36 = arith.constant 5.000000e-01 : f32
    %83 = vector.broadcast %cst_36 : f32 to vector<16x128xf32>
    %84 = arith.mulf %83, %82 : vector<16x128xf32>
    %cst_37 = arith.constant 0.707106769 : f32
    %85 = vector.broadcast %cst_37 : f32 to vector<16x128xf32>
    %86 = arith.mulf %82, %85 : vector<16x128xf32>
    %87 = math.erf %86 : vector<16x128xf32>
    %cst_38 = arith.constant 1.000000e+00 : f32
    %88 = vector.broadcast %cst_38 : f32 to vector<16x128xf32>
    %89 = arith.addf %88, %87 : vector<16x128xf32>
    %90 = arith.mulf %84, %89 : vector<16x128xf32>
    %91 = arith.addf %90, %1 : vector<16x128xf32>
    %cst_39 = arith.constant 5.000000e-01 : f32
    %92 = vector.broadcast %cst_39 : f32 to vector<16x128xf32>
    %93 = arith.mulf %91, %92 : vector<16x128xf32>
    %94 = arith.truncf %93 : vector<16x128xf32> to vector<16x128xbf16>
    %c0_40 = arith.constant 0 : index
    %c0_41 = arith.constant 0 : index
    %95 = vector.load %arg12[%c0_40, %c0_41] : memref<16x128xbf16, #tpu.memory_space<vmem>>, vector<16x128xbf16>
    tpu.vector_store %arg12[%c0_40, %c0_41], %94 {strides = array<i32>} : memref<16x128xbf16, #tpu.memory_space<vmem>>, vector<16x128xbf16>,
    return
  }
  func.func @transform_0(%arg0: i32) -> (i32, i32) {
    %c0_i32 = arith.constant 0 : i32
    %c0_i32_0 = arith.constant 0 : i32
    return %arg0, %c0_i32 : i32, i32
  }
  func.func @transform_1(%arg0: i32) -> (i32, i32) {
    %c0_i32 = arith.constant 0 : i32
    %c0_i32_0 = arith.constant 0 : i32
    %c0_i32_1 = arith.constant 0 : i32
    return %c0_i32, %c0_i32_0 : i32, i32
  }
  func.func @transform_2(%arg0: i32) -> (i32, i32) {
    %c0_i32 = arith.constant 0 : i32
    %c0_i32_0 = arith.constant 0 : i32
    %c0_i32_1 = arith.constant 0 : i32
    return %c0_i32, %c0_i32_0 : i32, i32
  }
  func.func @transform_3(%arg0: i32) -> (i32, i32) {
    %c0_i32 = arith.constant 0 : i32
    %c0_i32_0 = arith.constant 0 : i32
    %c0_i32_1 = arith.constant 0 : i32
    return %c0_i32, %c0_i32_0 : i32, i32
  }
  func.func @transform_4(%arg0: i32) -> (i32, i32) {
    %c0_i32 = arith.constant 0 : i32
    %c0_i32_0 = arith.constant 0 : i32
    %c0_i32_1 = arith.constant 0 : i32
    return %c0_i32, %c0_i32_0 : i32, i32
  }
  func.func @transform_5(%arg0: i32) -> (i32, i32) {
    %c0_i32 = arith.constant 0 : i32
    %c0_i32_0 = arith.constant 0 : i32
    %c0_i32_1 = arith.constant 0 : i32
    return %c0_i32, %c0_i32_0 : i32, i32
  }
  func.func @transform_6(%arg0: i32) -> (i32, i32) {
    %c0_i32 = arith.constant 0 : i32
    %c0_i32_0 = arith.constant 0 : i32
    %c0_i32_1 = arith.constant 0 : i32
    return %c0_i32, %c0_i32_0 : i32, i32
  }
  func.func @transform_7(%arg0: i32) -> (i32, i32) {
    %c0_i32 = arith.constant 0 : i32
    %c0_i32_0 = arith.constant 0 : i32
    %c0_i32_1 = arith.constant 0 : i32
    return %c0_i32, %c0_i32_0 : i32, i32
  }
  func.func @transform_8(%arg0: i32) -> (i32, i32) {
    %c0_i32 = arith.constant 0 : i32
    %c0_i32_0 = arith.constant 0 : i32
    %c0_i32_1 = arith.constant 0 : i32
    return %c0_i32, %c0_i32_0 : i32, i32
  }
  func.func @transform_9(%arg0: i32) -> (i32, i32) {
    %c0_i32 = arith.constant 0 : i32
    %c0_i32_0 = arith.constant 0 : i32
    %c0_i32_1 = arith.constant 0 : i32
    return %c0_i32, %c0_i32_0 : i32, i32
  }
  func.func @transform_10(%arg0: i32) -> (i32, i32) {
    %c0_i32 = arith.constant 0 : i32
    %c0_i32_0 = arith.constant 0 : i32
    %c0_i32_1 = arith.constant 0 : i32
    return %c0_i32, %c0_i32_0 : i32, i32
  }
  func.func @transform_11(%arg0: i32) -> (i32, i32) {
    %c0_i32 = arith.constant 0 : i32
    %c0_i32_0 = arith.constant 0 : i32
    return %arg0, %c0_i32 : i32, i32
  }
}

</mosaic_0001>

<bundles_post_ra>
// kernel: xlstm_lm_forward.3
= control target key start
LH: loop header
LB: loop body
LE: loop exit
PB: predicated region body
PF: predicated region fallthrough
CT: control target
= control target key end

     0   :  { %v433_v2 = vmov 0   ;;  %s563_s0 = inlined_call_operand.vmem [shape: bf16[16,128], index: 0, kind: input, shape index: {}]   ;;  %s564_s1 = inlined_call_operand.vmem [shape: bf16[128,512], index: 1, kind: input, shape index: {}]   ;;  %s565_s2 = inlined_call_operand.hbm [shape: f32[16,512], index: 2, kind: output, shape index: {}]  }
   0x1   :  { %v360_v0 = vld [vmem:[%s564_s1 + $0x4] ss:$16 sps:$4 sm:$0xff]   ;;  %v362_v1 = vld [vmem:[%s564_s1 + $0xc] ss:$16 sps:$4 sm:$0xff]   ;;  %245 = vmatprep.mubr.bf16.mxu0 %v433_v2  ;;  %288 = vmatprep.mubr.bf16.mxu1 %v433_v2  ;;  %v364_v3 = vld [vmem:[%s564_s1] ss:$16 sps:$4 sm:$0xff]  }
   0x2   :  { %213 = vmatprep.subr.bf16.mxu0 %v360_v0  ;;  %v365_v4 = vld [vmem:[%s564_s1 + $0x8] ss:$16 sps:$4 sm:$0xff]   ;;  %256 = vmatprep.subr.bf16.mxu1 %v362_v1  ;;  %v366_v5 = vld [vmem:[%s564_s1 + $0x24] ss:$16 sps:$4 sm:$0xff]   ;;  %v368_v6 = vld [vmem:[%s564_s1 + $0x2c] ss:$16 sps:$4 sm:$0xff]  }
   0x3   :  { %214 = vmatpush1.bf16.msra.mxu0 %v364_v3  ;;  %257 = vmatpush1.bf16.msra.mxu1 %v365_v4  ;;  %v370_v7 = vld [vmem:[%s564_s1 + $0x20] ss:$16 sps:$4 sm:$0xff]   ;;  %v371_v8 = vld [vmem:[%s564_s1 + $0x28] ss:$16 sps:$4 sm:$0xff]   ;;  %v372_v9 = vld [vmem:[%s564_s1 + $0x44] ss:$16 sps:$4 sm:$0xff]  }
   0x4   :  { %215 = vmatprep.subr.bf16.mxu0 %v366_v5  ;;  %258 = vmatprep.subr.bf16.mxu1 %v368_v6  ;;  %v374_v10 = vld [vmem:[%s564_s1 + $0x4c] ss:$16 sps:$4 sm:$0xff]   ;;  %v376_v11 = vld [vmem:[%s564_s1 + $0x40] ss:$16 sps:$4 sm:$0xff]   ;;  %v377_v12 = vld [vmem:[%s564_s1 + $0x48] ss:$16 sps:$4 sm:$0xff]  }
   0x5   :  { %v378_v13 = vld [vmem:[%s564_s1 + $0x64] ss:$16 sps:$4 sm:$0xff]   ;;  %v380_v14 = vld [vmem:[%s564_s1 + $0x6c] ss:$16 sps:$4 sm:$0xff]   ;;  %v382_v15 = vld [vmem:[%s564_s1 + $0x60] ss:$16 sps:$4 sm:$0xff]  }
   0x6   :  { %v383_v16 = vld [vmem:[%s564_s1 + $0x68] ss:$16 sps:$4 sm:$0xff]   ;;  %v384_v17 = vld [vmem:[%s564_s1 + $0x84] ss:$16 sps:$4 sm:$0xff]   ;;  %v386_v18 = vld [vmem:[%s564_s1 + $0x8c] ss:$16 sps:$4 sm:$0xff]  }
   0x7   :  { %216 = vmatpush1.bf16.msra.mxu0 %v370_v7  ;;  %259 = vmatpush1.bf16.msra.mxu1 %v371_v8  ;;  %v388_v19 = vld [vmem:[%s564_s1 + $0x80] ss:$16 sps:$4 sm:$0xff]   ;;  %v389_v20 = vld [vmem:[%s564_s1 + $0x88] ss:$16 sps:$4 sm:$0xff]   ;;  %v390_v21 = vld [vmem:[%s564_s1 + $0xa4] ss:$16 sps:$4 sm:$0xff]  }
   0x8   :  { %217 = vmatprep.subr.bf16.mxu0 %v372_v9  ;;  %260 = vmatprep.subr.bf16.mxu1 %v374_v10  ;;  %v392_v22 = vld [vmem:[%s564_s1 + $0xac] ss:$16 sps:$4 sm:$0xff]   ;;  %v394_v23 = vld [vmem:[%s564_s1 + $0xa0] ss:$16 sps:$4 sm:$0xff]   ;;  %v395_v24 = vld [vmem:[%s564_s1 + $0xa8] ss:$16 sps:$4 sm:$0xff]  }
   0x9   :  { %v396_v25 = vld [vmem:[%s564_s1 + $0xc4] ss:$16 sps:$4 sm:$0xff]   ;;  %v398_v26 = vld [vmem:[%s564_s1 + $0xcc] ss:$16 sps:$4 sm:$0xff]  }
   0xb   :  { %218 = vmatpush1.bf16.msra.mxu0 %v376_v11  ;;  %261 = vmatpush1.bf16.msra.mxu1 %v377_v12 }
   0xc   :  { %219 = vmatprep.subr.bf16.mxu0 %v378_v13  ;;  %262 = vmatprep.subr.bf16.mxu1 %v380_v14 }
   0xf   :  { %220 = vmatpush1.bf16.msra.mxu0 %v382_v15  ;;  %263 = vmatpush1.bf16.msra.mxu1 %v383_v16 }
  0x10   :  { %221 = vmatprep.subr.bf16.mxu0 %v384_v17  ;;  %264 = vmatprep.subr.bf16.mxu1 %v386_v18 }
  0x13   :  { %222 = vmatpush1.bf16.msra.mxu0 %v388_v19  ;;  %265 = vmatpush1.bf16.msra.mxu1 %v389_v20 }
  0x14   :  { %223 = vmatprep.subr.bf16.mxu0 %v390_v21  ;;  %266 = vmatprep.subr.bf16.mxu1 %v392_v22 }
  0x15   :  { %7 = vsyncpa [#allocation3], 0  ;;  %v400_v27 = vld [vmem:[%s564_s1 + $0xc0] ss:$16 sps:$4 sm:$0xff]   ;;  %v401_v28 = vld [vmem:[%s564_s1 + $0xc8] ss:$16 sps:$4 sm:$0xff]  }
  0x16   :  { %v402_v29 = vld [vmem:[%s564_s1 + $0xe4] ss:$16 sps:$4 sm:$0xff]   ;;  %v404_v30 = vld [vmem:[%s564_s1 + $0xec] ss:$16 sps:$4 sm:$0xff]   ;;  %v406_v31 = vld [vmem:[%s564_s1 + $0xe0] ss:$16 sps:$4 sm:$0xff]  }
  0x17   :  { %224 = vmatpush1.bf16.msra.mxu0 %v394_v23  ;;  %267 = vmatpush1.bf16.msra.mxu1 %v395_v24  ;;  %v407_v32 = vld [vmem:[%s564_s1 + $0xe8] ss:$16 sps:$4 sm:$0xff]   ;;  %v408_v33 = vld [vmem:[%s563_s0] sm:$0xff]   ;;  %s434_s19 = smov [#allocation2]  }
  0x18   :  { %225 = vmatprep.subr.bf16.mxu0 %v396_v25  ;;  %268 = vmatprep.subr.bf16.mxu1 %v398_v26  ;;  %s312_s20 = sshll.u32 %s434_s19, 4  ;;  %s313_s20 = int_to_ptr.vmem [resolvable:$true] %s312_s20 }
  0x19   :  { %s409_s0 = scalar_lea.vmem %s313_s20, 1024  ;;  %p414_p1 = scmp.lt.s32.totalorder %s313_s20, %s313_s20 }
  0x1a   :  { %p410_p0 = scmp.ne.s32.totalorder %s313_s20, %s409_s0  ;;  %p415_p2 = scmp.lt.s32.totalorder %s409_s0, %s409_s0 }
  0x1b   :  { %226 = vmatpush1.bf16.msra.mxu0 %v400_v27  ;;  %269 = vmatpush1.bf16.msra.mxu1 %v401_v28 }
  0x1c   :  { %227 = vmatprep.subr.bf16.mxu0 %v402_v29  ;;  %270 = vmatprep.subr.bf16.mxu1 %v404_v30  ;;  %p416_p3 = por %p415_p2, %p414_p1 }
  0x1e   :  { %p417_p4 = pnand %p416_p3, %p410_p0 }
  0x1f   :  { %228 = vmatpush1.bf16.msra.mxu0 %v406_v31  ;;  %271 = vmatpush1.bf16.msra.mxu1 %v407_v32 }
  0x22   :  { %246 = vmatmul.mubr.bf16.vlgmr.msra.gmra.mrb[0].mxu0 %v408_v33  ;;  %289 = vmatmul.mubr.bf16.vlgmr.msra.gmra.mrb[0].mxu1 %v408_v33 }
  0xf5   :  { %v247_v34 = vpop.f32.mrb[0].mxu0  ;;  %v290_v35 = vpop.f32.mrb[0].mxu1 }
  0xf6   :  { %299 = vst [vmem:[#allocation2] sm:$0xff] %v247_v34  ;;  %301 = vst [vmem:[#allocation2 + $0x10] sm:$0xff] %v290_v35  ;;  %v249_v36 = vpop.f32.mrb[1].mxu0  ;;  %v292_v37 = vpop.f32.mrb[1].mxu1 }
  0xf7   :  { %300 = vst [vmem:[#allocation2 + $0x8] sm:$0xff] %v249_v36  ;;  %302 = vst [vmem:[#allocation2 + $0x18] sm:$0xff] %v292_v37  ;;  %v251_v38 = vpop.f32.mrb[2].mxu0  ;;  %v294_v39 = vpop.f32.mrb[2].mxu1 }
  0xf8   :  { %303 = vst [vmem:[#allocation2 + $0x20] sm:$0xff] %v251_v38  ;;  %305 = vst [vmem:[#allocation2 + $0x30] sm:$0xff] %v294_v39  ;;  %v253_v40 = vpop.f32.mrb[3].mxu0  ;;  %v296_v41 = vpop.f32.mrb[3].mxu1 }
  0xf9   :  { %304 = vst [vmem:[#allocation2 + $0x28] sm:$0xff] %v253_v40  ;;  %306 = vst [vmem:[#allocation2 + $0x38] sm:$0xff] %v296_v41 }
  0xfa   :  { %420 = shalt.err (!%p417_p4)
}
  0xfb   :  { %s421_s22 = scalar_lea.hbm %s565_s2, 1024 }
  0xfc   :  { %p422_p5 = scmp.ne.s32.totalorder %s565_s2, %s421_s22  ;;  %p425_p6 = scmp.lt.u32.totalorder %s421_s22, %s565_s2 }
  0xfe   :  { %p427_p7 = pnand %p425_p6, %p422_p5 }
 0x100   :  { %430 = shalt.err (!%p427_p7)
}
 0x101   :  { %s435_s27 = smov 512   ;;  %s436_s28 = smov 32  }
 0x102   :  { %318 = dma.vmem_to_hbm [thread:$0]  %s313_s20, 1024, %s565_s2, [#allocation3], %s435_s27, %s435_s27, %s436_s28  }
 0x103   :  { %431 = dma.done.wait [#allocation3], 1024  }
 0x104   :  { %432 = vsyncadd [#allocation3], 4294966272 }
 0x105   :  { %322 = vsyncpa [#allocation3], 1 }

// kernel: xlstm_lm_forward.2
= control target key start
LH: loop header
LB: loop body
LE: loop exit
PB: predicated region body
PF: predicated region fallthrough
CT: control target
= control target key end

     0   :  { %v993_v1 = vmov 0   ;;  %v77_v18 = vlaneseq  ;;  %vm465_vm0 = vcmask 1043456   ;;  %vm461_vm1 = vcmask 64512   ;;  %s1257_s1 = inlined_call_operand.vmem [shape: bf16[128,512], index: 1, kind: input, shape index: {}]   ;;  %s1258_s0 = inlined_call_operand.vmem [shape: bf16[16,128], index: 0, kind: input, shape index: {}]   ;;  %s1259_s2 = inlined_call_operand.vmem [shape: f32[1,512], index: 2, kind: input, shape index: {}]   ;;  %s1260_s7 = inlined_call_operand.vmem [shape: bf16[256,128], index: 7, kind: input, shape index: {}]   ;;  %s1261_s3 = inlined_call_operand.vmem [shape: f32[1,256], index: 3, kind: input, shape index: {}]   ;;  %s1262_s4 = inlined_call_operand.vmem [shape: f32[1,256], index: 4, kind: input, shape index: {}]   ;;  %s1263_s5 = inlined_call_operand.vmem [shape: bf16[8,8], index: 5, kind: input, shape index: {}]   ;;  %s1264_s6 = inlined_call_operand.vmem [shape: f32[8,256], index: 6, kind: input, shape index: {}]   ;;  %s1265_s8 = inlined_call_operand.vmem [shape: f32[1,128], index: 8, kind: input, shape index: {}]   ;;  %s1266_s9 = inlined_call_operand.vmem [shape: f32[1,128], index: 9, kind: input, shape index: {}]   ;;  %s1267_s10 = inlined_call_operand.vmem [shape: f32[1,128], index: 10, kind: input, shape index: {}]   ;;  %s1268_s11 = inlined_call_operand.vmem [shape: bf16[16,128], index: 11, kind: output, shape index: {}]  }
   0x1   :  { %v899_v0 = vld [vmem:[%s1257_s1 + $0xc] ss:$16 sps:$4 sm:$0xff]   ;;  %338 = vmatprep.mubr.bf16.mxu1 %v993_v1  ;;  %295 = vmatprep.mubr.bf16.mxu0 %v993_v1  ;;  %v901_v2 = vld [vmem:[%s1257_s1 + $0x8] ss:$16 sps:$4 sm:$0xff]   ;;  %v1107_v17 = vld [vmem:[%s1258_s0] sm:$0xff]  }
   0x2   :  { %306 = vmatprep.subr.bf16.mxu1 %v899_v0  ;;  %v902_v3 = vld [vmem:[%s1257_s1 + $0x2c] ss:$16 sps:$4 sm:$0xff]   ;;  %v904_v4 = vld [vmem:[%s1257_s1 + $0x28] ss:$16 sps:$4 sm:$0xff]   ;;  %v1111_v19 = vshrl.u32 %v77_v18, 7 }
   0x3   :  { %307 = vmatpush1.bf16.msra.mxu1 %v901_v2  ;;  %v905_v5 = vld [vmem:[%s1257_s1 + $0x4c] ss:$16 sps:$4 sm:$0xff]   ;;  %v907_v6 = vld [vmem:[%s1257_s1 + $0x48] ss:$16 sps:$4 sm:$0xff]   ;;  %v1117_v21 = vld [vmem:[%s1259_s2] sm:$0xf] }
   0x4   :  { %308 = vmatprep.subr.bf16.mxu1 %v902_v3  ;;  %v908_v7 = vld [vmem:[%s1257_s1 + $0x6c] ss:$16 sps:$4 sm:$0xff]   ;;  %v910_v8 = vld [vmem:[%s1257_s1 + $0x68] ss:$16 sps:$4 sm:$0xff]   ;;  %v87_v20 = vsub.s32 2, %v1111_v19  ;;  %v91_v22 = vsub.s32 3, %v1111_v19 }
   0x5   :  { %v911_v9 = vld [vmem:[%s1257_s1 + $0x8c] ss:$16 sps:$4 sm:$0xff]   ;;  %v913_v10 = vld [vmem:[%s1257_s1 + $0x88] ss:$16 sps:$4 sm:$0xff]   ;;  %v924_v55 = vld [vmem:[%s1257_s1 + $0x4] ss:$16 sps:$4 sm:$0xff]  }
   0x6   :  { %v914_v11 = vld [vmem:[%s1257_s1 + $0xac] ss:$16 sps:$4 sm:$0xff]   ;;  %v916_v12 = vld [vmem:[%s1257_s1 + $0xa8] ss:$16 sps:$4 sm:$0xff]   ;;  %v88_v23 = vrot.slane %v1117_v21, %v87_v20  ;;  %v92_v24 = vrot.slane %v1117_v21, %v91_v22  ;;  %v926_v56 = vld [vmem:[%s1257_s1] ss:$16 sps:$4 sm:$0xff]   ;;  %263 = vmatprep.subr.bf16.mxu0 %v924_v55 }
   0x7   :  { %309 = vmatpush1.bf16.msra.mxu1 %v904_v4  ;;  %v917_v13 = vld [vmem:[%s1257_s1 + $0xcc] ss:$16 sps:$4 sm:$0xff]   ;;  %v919_v14 = vld [vmem:[%s1257_s1 + $0xc8] ss:$16 sps:$4 sm:$0xff]   ;;  %v927_v57 = vld [vmem:[%s1257_s1 + $0x24] ss:$16 sps:$4 sm:$0xff]   ;;  %264 = vmatpush1.bf16.msra.mxu0 %v926_v56 }
   0x8   :  { %310 = vmatprep.subr.bf16.mxu1 %v905_v5  ;;  %v920_v15 = vld [vmem:[%s1257_s1 + $0xec] ss:$16 sps:$4 sm:$0xff]   ;;  %v922_v16 = vld [vmem:[%s1257_s1 + $0xe8] ss:$16 sps:$4 sm:$0xff]   ;;  %v929_v58 = vld [vmem:[%s1257_s1 + $0x20] ss:$16 sps:$4 sm:$0xff]   ;;  %265 = vmatprep.subr.bf16.mxu0 %v927_v57 }
   0x9   :  { %v930_v59 = vld [vmem:[%s1257_s1 + $0x44] ss:$16 sps:$4 sm:$0xff]   ;;  %v932_v60 = vld [vmem:[%s1257_s1 + $0x40] ss:$16 sps:$4 sm:$0xff]  }
   0xa   :  { %v933_v61 = vld [vmem:[%s1257_s1 + $0x64] ss:$16 sps:$4 sm:$0xff]   ;;  %v935_v62 = vld [vmem:[%s1257_s1 + $0x60] ss:$16 sps:$4 sm:$0xff]  }
   0xb   :  { %311 = vmatpush1.bf16.msra.mxu1 %v907_v6  ;;  %266 = vmatpush1.bf16.msra.mxu0 %v929_v58  ;;  %v936_v63 = vld [vmem:[%s1257_s1 + $0x84] ss:$16 sps:$4 sm:$0xff]   ;;  %v938_v0 = vld [vmem:[%s1257_s1 + $0x80] ss:$16 sps:$4 sm:$0xff]  }
   0xc   :  { %312 = vmatprep.subr.bf16.mxu1 %v908_v7  ;;  %267 = vmatprep.subr.bf16.mxu0 %v930_v59  ;;  %v939_v2 = vld [vmem:[%s1257_s1 + $0xa4] ss:$16 sps:$4 sm:$0xff]   ;;  %v941_v3 = vld [vmem:[%s1257_s1 + $0xa0] ss:$16 sps:$4 sm:$0xff]  }
   0xd   :  { %v942_v4 = vld [vmem:[%s1257_s1 + $0xc4] ss:$16 sps:$4 sm:$0xff]   ;;  %v944_v5 = vld [vmem:[%s1257_s1 + $0xc0] ss:$16 sps:$4 sm:$0xff]  }
   0xf   :  { %313 = vmatpush1.bf16.msra.mxu1 %v910_v8  ;;  %268 = vmatpush1.bf16.msra.mxu0 %v932_v60 }
  0x10   :  { %314 = vmatprep.subr.bf16.mxu1 %v911_v9  ;;  %269 = vmatprep.subr.bf16.mxu0 %v933_v61 }
  0x13   :  { %315 = vmatpush1.bf16.msra.mxu1 %v913_v10  ;;  %270 = vmatpush1.bf16.msra.mxu0 %v935_v62 }
  0x14   :  { %316 = vmatprep.subr.bf16.mxu1 %v914_v11  ;;  %271 = vmatprep.subr.bf16.mxu0 %v936_v63  ;;  %v458_v63 = vld [vmem:[%s1263_s5] sm:$0xf] }
  0x17   :  { %317 = vmatpush1.bf16.msra.mxu1 %v916_v12  ;;  %272 = vmatpush1.bf16.msra.mxu0 %v938_v0 }
  0x18   :  { %318 = vmatprep.subr.bf16.mxu1 %v917_v13  ;;  %273 = vmatprep.subr.bf16.mxu0 %v939_v2 }
  0x1b   :  { %319 = vmatpush1.bf16.msra.mxu1 %v919_v14  ;;  %274 = vmatpush1.bf16.msra.mxu0 %v941_v3 }
  0x1c   :  { %320 = vmatprep.subr.bf16.mxu1 %v920_v15  ;;  %275 = vmatprep.subr.bf16.mxu0 %v942_v4 }
  0x1f   :  { %321 = vmatpush1.bf16.msra.mxu1 %v922_v16  ;;  %276 = vmatpush1.bf16.msra.mxu0 %v944_v5 }
  0x22   :  { %339 = vmatmul.mubr.bf16.vlgmr.msra.gmra.mrb[0].mxu1 %v1107_v17 }
  0x23   :  { %504 = vmatprep.mubr.bf16.mxu1 %v993_v1 }
  0xf5   :  { %v340_v25 = vpop.f32.mrb[0].mxu1 }
  0xf6   :  { %v341_v26 = vadd.f32 %v340_v25, %v88_v23  ;;  %v342_v27 = vpop.f32.mrb[1].mxu1  ;;  %v948_v25 = vld [vmem:[%s1260_s7 + $0x40] sm:$0xff]  }
  0xf7   :  { %v343_v28 = vadd.f32 %v342_v27, %v92_v24  ;;  %v344_v29 = vpop.f32.mrb[2].mxu1  ;;  %v950_v27 = vld [vmem:[%s1260_s7 + $0x48] sm:$0xff]  }
  0xf8   :  { %v359_v30 = vmul.f32 0.70710677, %v341_v26  ;;  %v345_v31 = vadd.f32 %v344_v29, %v88_v23  ;;  %v346_v32 = vpop.f32.mrb[3].mxu1  ;;  %v351_v39 = vmul.f32 0.5, %v341_v26  ;;  %v945_v23 = vld [vmem:[%s1257_s1 + $0xe4] ss:$16 sps:$4 sm:$0xff]  }
  0xf9   :  { %v360_v33 = vmul.f32 0.70710677, %v343_v28  ;;  %v347_v34 = vadd.f32 %v346_v32, %v92_v24  ;;  %v352_v42 = vmul.f32 0.5, %v343_v28  ;;  %v947_v24 = vld [vmem:[%s1257_s1 + $0xe0] ss:$16 sps:$4 sm:$0xff]   ;;  %277 = vmatprep.subr.bf16.mxu0 %v945_v23  ;;  %v951_v28 = vld [vmem:[%s1260_s7 + $0x8] sm:$0xff]  }
  0xfa   :  { %965 = verf.f32 %v359_v30  ;;  %v363_v35 = vmul.f32 0.70710677, %v345_v31  ;;  %v355_v47 = vmul.f32 0.5, %v345_v31  ;;  %278 = vmatpush1.bf16.msra.mxu0 %v947_v24  ;;  %v949_v26 = vld [vmem:[%s1260_s7] sm:$0xff]   ;;  %v952_v29 = vld [vmem:[%s1260_s7 + $0x50] sm:$0xff]   ;;  %v954_v31 = vld [vmem:[%s1260_s7 + $0x58] sm:$0xff]  }
  0xfb   :  { %967 = verf.f32 %v360_v33  ;;  %v364_v36 = vmul.f32 0.70710677, %v347_v34  ;;  %v356_v48 = vmul.f32 0.5, %v347_v34  ;;  %876 = vmatprep.subr.bf16.mxu0 %v948_v25  ;;  %v953_v30 = vld [vmem:[%s1260_s7 + $0x10] sm:$0xff]   ;;  %v955_v32 = vld [vmem:[%s1260_s7 + $0x18] sm:$0xff]  }
  0xfc   :  { %969 = verf.f32 %v363_v35 }
  0xfd   :  { %971 = verf.f32 %v364_v36  ;;  %296 = vmatmul.mubr.bf16.vlgmr.msra.gmra.mrb[0].mxu0 %v1107_v17 }
  0xfe   :  { %877 = vmatpush3.bf16.msra.mxu0 %v949_v26 }
  0xff   :  { %878 = vmatprep.subr.bf16.mxu0 %v950_v27 }
 0x102   :  { %879 = vmatpush3.bf16.msra.mxu0 %v951_v28 }
 0x103   :  { %880 = vmatprep.subr.bf16.mxu0 %v952_v29 }
 0x104   :  { %v966_v37 = vpop.eup %965 }
 0x105   :  { %v968_v38 = vpop.eup %967  ;;  %v375_v40 = vadd.f32 1.0, %v966_v37 }
 0x106   :  { %v970_v41 = vpop.eup %969  ;;  %v376_v43 = vadd.f32 1.0, %v968_v38  ;;  %881 = vmatpush3.bf16.msra.mxu0 %v953_v30 }
 0x107   :  { %v972_v44 = vpop.eup %971  ;;  %v383_v45 = vmul.f32 %v375_v40, %v351_v39  ;;  %v379_v46 = vadd.f32 1.0, %v970_v41  ;;  %882 = vmatprep.subr.bf16.mxu0 %v954_v31  ;;  %v83_v39 = vsub.s32 1, %v1111_v19  ;;  %v79_v40 = vsub.s32 0, %v1111_v19  ;;  %v389_v41 = vld [vmem:[%s1261_s3] sm:$0x3] }
 0x108   :  { %v384_v49 = vmul.f32 %v376_v43, %v352_v42  ;;  %v380_v50 = vadd.f32 1.0, %v972_v44  ;;  %v390_v42 = vld [vmem:[%s1262_s4] sm:$0x3] }
 0x109   :  { %v387_v52 = vmul.f32 %v379_v46, %v355_v47  ;;  %v432_v43 = vrot.slane %v389_v41, %v83_v39  ;;  %v428_v44 = vrot.slane %v389_v41, %v79_v40  ;;  %v447_v47 = vrot.slane %v390_v42, %v83_v39 }
 0x10a   :  { %v391_v51 = vadd.f32 %v384_v49, %v383_v45  ;;  %v388_v53 = vmul.f32 %v380_v50, %v356_v48  ;;  %883 = vmatpush3.bf16.msra.mxu0 %v955_v32  ;;  %v80_v4 = vrot.slane %v1117_v21, %v79_v40 }
 0x10c   :  { %392 = vadd.xlane.f32.xlu0 %v391_v51  ;;  %v394_v54 = vadd.f32 %v388_v53, %v387_v52 }
 0x110   :  { %395 = vadd.xlane.f32.xlu0 %v394_v54 }
 0x199   :  { %v393_v6 = vpop.xlane.xlu0 %392 }
 0x19a   :  { %v398_v7 = vmul.f32 0.00390625, %v393_v6 }
 0x19c   :  { %v400_v8 = vsub.f32 %v383_v45, %v398_v7  ;;  %v401_v9 = vsub.f32 %v384_v49, %v398_v7  ;;  %v443_v49 = vrot.slane %v390_v42, %v79_v40 }
 0x19d   :  { %v396_v10 = vpop.xlane.xlu0 %395 }
 0x19e   :  { %v399_v11 = vmul.f32 0.00390625, %v396_v10  ;;  %v404_v12 = vmul.f32 %v400_v8, %v400_v8  ;;  %v405_v13 = vmul.f32 %v401_v9, %v401_v9 }
 0x1a0   :  { %v402_v14 = vsub.f32 %v387_v52, %v399_v11  ;;  %v403_v15 = vsub.f32 %v388_v53, %v399_v11  ;;  %v408_v16 = vadd.f32 %v405_v13, %v404_v12  ;;  %v956_v11 = vld [vmem:[%s1260_s7 + $0x60] sm:$0xff]   ;;  %v959_v13 = vld [vmem:[%s1260_s7 + $0x28] sm:$0xff]  }
 0x1a1   :  { %v957_v12 = vld [vmem:[%s1260_s7 + $0x20] sm:$0xff]   ;;  %884 = vmatprep.subr.bf16.mxu0 %v956_v11 }
 0x1a2   :  { %409 = vadd.xlane.f32.xlu1 %v408_v16  ;;  %v406_v18 = vmul.f32 %v402_v14, %v402_v14  ;;  %v407_v20 = vmul.f32 %v403_v15, %v403_v15  ;;  %885 = vmatpush3.bf16.msra.mxu0 %v957_v12  ;;  %v962_v16 = vld [vmem:[%s1260_s7 + $0x78] sm:$0xff]  }
 0x1a4   :  { %v411_v22 = vadd.f32 %v407_v20, %v406_v18  ;;  %v963_v18 = vld [vmem:[%s1260_s7 + $0x38] sm:$0xff]   ;;  %v84_v20 = vrot.slane %v1117_v21, %v83_v39  ;;  %v459_v21 = vld [vmem:[%s1264_s6] sm:$0xff] }
 0x1a6   :  { %412 = vadd.xlane.f32.xlu1 %v411_v22 }
 0x1d0   :  { %v297_v5 = vpop.f32.mrb[0].mxu0 }
 0x1d1   :  { %v298_v6 = vadd.f32 %v297_v5, %v80_v4  ;;  %v299_v7 = vpop.f32.mrb[1].mxu0 }
 0x1d2   :  { %v300_v22 = vadd.f32 %v299_v7, %v84_v20 }
 0x1d3   :  { %v357_v23 = vmul.f32 0.70710677, %v298_v6  ;;  %v349_v30 = vmul.f32 0.5, %v298_v6 }
 0x1d4   :  { %v358_v24 = vmul.f32 0.70710677, %v300_v22  ;;  %v350_v32 = vmul.f32 0.5, %v300_v22 }
 0x22f   :  { %v410_v33 = vpop.xlane.xlu1 %409 }
 0x230   :  { %v414_v34 = vmul.f32 0.00390625, %v410_v33 }
 0x232   :  { %v416_v35 = vadd.f32 1e-05, %v414_v34  ;;  %v460_v34 = vld [vmem:[%s1264_s6 + $0x8] sm:$0xff] }
 0x233   :  { %v413_v36 = vpop.xlane.xlu1 %412 }
 0x234   :  { %973 = vrsqrt.f32 %v416_v35  ;;  %v415_v37 = vmul.f32 0.00390625, %v413_v36 }
 0x236   :  { %v417_v38 = vadd.f32 1e-05, %v415_v37 }
 0x238   :  { %975 = vrsqrt.f32 %v417_v38 }
 0x239   :  { %977 = verf.f32 %v357_v23 }
 0x23a   :  { %979 = verf.f32 %v358_v24 }
 0x23e   :  { %v974_v45 = vpop.eup %973 }
 0x23f   :  { %v421_v46 = vmul.f32 %v974_v45, %v401_v9  ;;  %v420_v48 = vmul.f32 %v974_v45, %v400_v8  ;;  %v301_v8 = vpop.f32.mrb[2].mxu0 }
 0x240   :  { %v302_v9 = vadd.f32 %v301_v8, %v80_v4  ;;  %v303_v10 = vpop.f32.mrb[3].mxu0 }
 0x241   :  { %v436_v50 = vmul.f32 %v432_v43, %v421_v46  ;;  %v435_v51 = vmul.f32 %v428_v44, %v420_v48  ;;  %v304_v25 = vadd.f32 %v303_v10, %v84_v20 }
 0x242   :  { %v976_v52 = vpop.eup %975  ;;  %v361_v26 = vmul.f32 0.70710677, %v302_v9 }
 0x243   :  { %v451_v53 = vadd.f32 %v447_v47, %v436_v50  ;;  %v450_v19 = vadd.f32 %v443_v49, %v435_v51  ;;  %v423_v54 = vmul.f32 %v976_v52, %v403_v15  ;;  %v422_v55 = vmul.f32 %v976_v52, %v402_v14  ;;  %v960_v14 = vld [vmem:[%s1260_s7 + $0x70] sm:$0xff]   ;;  %v978_v28 = vpop.eup %977 }
 0x244   :  { %v961_v15 = vld [vmem:[%s1260_s7 + $0x30] sm:$0xff]   ;;  %v362_v27 = vmul.f32 0.70710677, %v304_v25  ;;  %981 = verf.f32 %v361_v26  ;;  %v980_v29 = vpop.eup %979  ;;  %v373_v31 = vadd.f32 1.0, %v978_v28  ;;  %v866_v28 = vld [vmem:[%s1267_s10] ss:$0 sm:$0xff] }
 0x245   :  { %v455_v56 = vpack.c.bf16 %v451_v53, %v451_v53  ;;  %v454_v57 = vpack.c.bf16 %v450_v19, %v450_v19  ;;  %v438_v58 = vmul.f32 %v432_v43, %v423_v54  ;;  %v437_v59 = vmul.f32 %v428_v44, %v422_v55 }
 0x246   :  { %983 = verf.f32 %v362_v27  ;;  %v374_v33 = vadd.f32 1.0, %v980_v29  ;;  %v381_v36 = vmul.f32 %v373_v31, %v349_v30 }
 0x247   :  { %844 = vmatprep.subr.msk.bf16.mxu1 %vm465_vm0, %v455_v56  ;;  %v467_v60 = vsel %vm465_vm0, %v454_v57, 0  ;;  %v453_v61 = vadd.f32 %v447_v47, %v438_v58  ;;  %v452_v62 = vadd.f32 %v443_v49, %v437_v59  ;;  %v353_v47 = vmul.f32 0.5, %v302_v9 }
 0x248   :  { %473 = vmatpush1.bf16.msra.mxu1 %v467_v60  ;;  %v382_v40 = vmul.f32 %v374_v33, %v350_v32  ;;  %v354_v49 = vmul.f32 0.5, %v304_v25  ;;  %v865_v25 = vld [vmem:[%s1266_s9] ss:$0 sm:$0xff] }
 0x249   :  { %v457_v0 = vpack.c.bf16 %v453_v61, %v453_v61  ;;  %v456_v2 = vpack.c.bf16 %v452_v62, %v452_v62 }
 0x24b   :  { %845 = vmatmul.mubr.msk.bf16.vlgmr.msra.gmra.mrb[4].mxu1 %vm461_vm1, %v458_v63  ;;  %846 = vmatprep.subr.msk.bf16.mxu1 %vm465_vm0, %v457_v0  ;;  %v514_v3 = vsel %vm465_vm0, %v456_v2, 0  ;;  %v848_v0 = vld [vmem:[%s1265_s8] ss:$0 sm:$0xff] }
 0x24c   :  { %520 = vmatpush1.bf16.msra.mxu1 %v514_v3  ;;  %551 = vmatprep.mubr.bf16.mxu1 %v993_v1  ;;  %v958_v1 = vld [vmem:[%s1260_s7 + $0x68] sm:$0xff]  }
 0x24d   :  { %886 = vmatprep.subr.bf16.mxu0 %v958_v1 }
 0x24e   :  { %887 = vmatpush3.bf16.msra.mxu0 %v959_v13  ;;  %v982_v39 = vpop.eup %981 }
 0x24f   :  { %888 = vmatprep.subr.bf16.mxu0 %v960_v14  ;;  %v377_v48 = vadd.f32 1.0, %v982_v39 }
 0x250   :  { %v984_v43 = vpop.eup %983 }
 0x251   :  { %v378_v50 = vadd.f32 1.0, %v984_v43  ;;  %v385_v52 = vmul.f32 %v377_v48, %v353_v47 }
 0x252   :  { %889 = vmatpush3.bf16.msra.mxu0 %v961_v15 }
 0x253   :  { %847 = vmatmul.mubr.msk.bf16.vlgmr.msra.gmra.mrb[8].mxu1 %vm461_vm1, %v458_v63  ;;  %890 = vmatprep.subr.bf16.mxu0 %v962_v16  ;;  %v386_v54 = vmul.f32 %v378_v50, %v354_v49 }
 0x256   :  { %891 = vmatpush3.bf16.msra.mxu0 %v963_v18 }
 0x31e   :  { %v506_v35 = vpop.f32.mrb[4].mxu1 }
 0x31f   :  { %v507_v37 = vadd.f32 %v506_v35, %v459_v21  ;;  %v508_v38 = vpop.f32.mrb[5].mxu1 }
 0x320   :  { %v509_v41 = vadd.f32 %v508_v38, %v460_v34  ;;  %v510_v42 = vpop.f32.mrb[6].mxu1 }
 0x321   :  { %v560_v44 = vmul.f32 %v507_v37, %v381_v36  ;;  %v511_v45 = vpop.f32.mrb[7].mxu1  ;;  %v41_v36 = vunpack.c.l.bf16 %v1107_v17 }
 0x322   :  { %v561_v46 = vmul.f32 %v509_v41, %v382_v40  ;;  %v42_v40 = vunpack.c.h.bf16 %v1107_v17 }
 0x326   :  { %v553_v51 = vpop.f32.mrb[8].mxu1 }
 0x327   :  { %v554_v53 = vadd.f32 %v553_v51, %v459_v21  ;;  %v555_v19 = vpop.f32.mrb[9].mxu1 }
 0x328   :  { %v556_v55 = vadd.f32 %v555_v19, %v460_v34  ;;  %v557_v56 = vpop.f32.mrb[10].mxu1 }
 0x329   :  { %v562_v57 = vmul.f32 %v554_v53, %v385_v52  ;;  %v558_v58 = vpop.f32.mrb[11].mxu1 }
 0x32a   :  { %v563_v59 = vmul.f32 %v556_v55, %v386_v54 }
 0x32b   :  { %v564_v60 = vpack.c.bf16 %v562_v57, %v560_v44 }
 0x32c   :  { %v565_v61 = vpack.c.bf16 %v563_v59, %v561_v46 }
 0x32e   :  { %733 = vmatprep.mubr.bf16.mxu0 %v565_v61 }
 0x32f   :  { %734 = vmatmul.mubr.bf16.vlgmr.msra.gmra.mrb[4].mxu0 %v564_v60 }
 0x402   :  { %v892_v62 = vpop.f32.mrb[4].mxu0 }
 0x403   :  { %v893_v63 = vpop.f32.mrb[5].mxu0 }
 0x404   :  { %v894_v2 = vadd.f32 %v893_v63, %v892_v62  ;;  %v895_v3 = vpop.f32.mrb[6].mxu0 }
 0x405   :  { %v896_v4 = vpop.f32.mrb[7].mxu0 }
 0x406   :  { %v897_v5 = vadd.f32 %v896_v4, %v895_v3  ;;  %v736_v6 = vadd.f32 %v894_v2, %v848_v0 }
 0x408   :  { %744 = vadd.xlane.f32.xlu0 %v736_v6  ;;  %v739_v7 = vadd.f32 %v897_v5, %v848_v0 }
 0x40a   :  { %746 = vadd.xlane.f32.xlu1 %v739_v7 }
 0x495   :  { %v745_v8 = vpop.xlane.xlu0 %744 }
 0x496   :  { %v749_v9 = vmul.f32 0.0078125, %v745_v8 }
 0x497   :  { %v747_v10 = vpop.xlane.xlu1 %746 }
 0x498   :  { %v751_v11 = vsub.f32 %v736_v6, %v749_v9  ;;  %v750_v12 = vmul.f32 0.0078125, %v747_v10 }
 0x49a   :  { %v752_v1 = vsub.f32 %v739_v7, %v750_v12  ;;  %v753_v13 = vmul.f32 %v751_v11, %v751_v11 }
 0x49c   :  { %755 = vadd.xlane.f32.xlu0 %v753_v13  ;;  %v754_v14 = vmul.f32 %v752_v1, %v752_v1 }
 0x49e   :  { %757 = vadd.xlane.f32.xlu1 %v754_v14 }
 0x529   :  { %v756_v15 = vpop.xlane.xlu0 %755 }
 0x52a   :  { %v759_v16 = vmul.f32 0.0078125, %v756_v15 }
 0x52b   :  { %v758_v18 = vpop.xlane.xlu1 %757 }
 0x52c   :  { %v761_v20 = vadd.f32 1e-05, %v759_v16  ;;  %v760_v22 = vmul.f32 0.0078125, %v758_v18 }
 0x52e   :  { %985 = vrsqrt.f32 %v761_v20  ;;  %v762_v23 = vadd.f32 1e-05, %v760_v22 }
 0x530   :  { %987 = vrsqrt.f32 %v762_v23 }
 0x538   :  { %v986_v24 = vpop.eup %985 }
 0x539   :  { %v765_v26 = vmul.f32 %v986_v24, %v751_v11 }
 0x53a   :  { %v988_v27 = vpop.eup %987 }
 0x53b   :  { %v773_v29 = vmul.f32 %v865_v25, %v765_v26  ;;  %v766_v30 = vmul.f32 %v988_v27, %v752_v1 }
 0x53d   :  { %v781_v31 = vadd.f32 %v866_v28, %v773_v29  ;;  %v774_v32 = vmul.f32 %v865_v25, %v766_v30 }
 0x53f   :  { %v785_v33 = vmul.f32 0.70710677, %v781_v31  ;;  %v782_v21 = vadd.f32 %v866_v28, %v774_v32  ;;  %v783_v37 = vmul.f32 0.5, %v781_v31 }
 0x541   :  { %989 = verf.f32 %v785_v33  ;;  %v786_v34 = vmul.f32 0.70710677, %v782_v21  ;;  %v784_v42 = vmul.f32 0.5, %v782_v21 }
 0x543   :  { %991 = verf.f32 %v786_v34 }
 0x54b   :  { %v990_v35 = vpop.eup %989 }
 0x54c   :  { %v789_v38 = vadd.f32 1.0, %v990_v35 }
 0x54d   :  { %v992_v39 = vpop.eup %991 }
 0x54e   :  { %v791_v41 = vmul.f32 %v789_v38, %v783_v37  ;;  %v790_v43 = vadd.f32 1.0, %v992_v39 }
 0x550   :  { %v793_v44 = vadd.f32 %v791_v41, %v41_v36  ;;  %v792_v45 = vmul.f32 %v790_v43, %v784_v42 }
 0x552   :  { %v794_v46 = vadd.f32 %v792_v45, %v42_v40  ;;  %v795_v47 = vmul.f32 0.5, %v793_v44 }
 0x554   :  { %v796_v48 = vmul.f32 0.5, %v794_v46 }
 0x556   :  { %v874_v49 = vpack.c.bf16 %v796_v48, %v795_v47 }
 0x558   :  { %875 = vst [vmem:[%s1268_s11] sm:$0xff] %v874_v49  }

</bundles_post_ra>
